<compile_context>
chip_gen: v6e
topology: v6e:2x2x1
jax: 0.10.0
libtpu: 0.0.40
codegen_flags: <defaults>
</compile_context>

<pallas_src>
import jax
import jax.numpy as jnp
import numpy as np
from jax.experimental import pallas as pl
from jax.experimental.pallas import tpu as pltpu


def _round_up(x, m):
  return ((x + m - 1) // m) * m


def _bin_block_kernel(x_ref, w_ref, bnscale_ref, bnshift_ref, alpha_ref,
                      slope_ref, o_ref):
  # x_ref:      (1, Cin, TS)    channels-major tile straight out of NCHW
  # w_ref:      (Cin, Cout, 1)  binarized 1x1-conv weight, +/-1, column per Cin
  # bnscale/bnshift: (Cin, 1)   folded eval-mode BatchNorm affine
  # alpha:      (Cout, 1)       per-output-channel rescale
  # slope:      (Cout, 1)       PReLU negative slope per output channel
  # o_ref:      (1, Cout, TS)
  x = x_ref[0]                                            # (Cin, TS)
  # center (BatchNorm2d eval affine, per input channel, broadcast along lanes)
  xc = x * bnscale_ref[...] + bnshift_ref[...]
  # STE sign quantizer forward: >=0 -> +1, <0 -> -1
  xq = jnp.where(xc >= 0, 1.0, -1.0).astype(jnp.float32)  # (Cin, TS)

  w = w_ref[...]                                          # (Cin, Cout, 1)
  cin = w_ref.shape[0]
  # Binary 1x1 conv as Cin VPU outer-product FMAs over the lane-dense spatial
  # axis (K=Cin is tiny, so an MXU matmul would be ~fully padded; VPU is cheaper
  # and exact in f32).
  y = w[0] * xq[0:1, :]                                   # (Cout,1)*(1,TS) -> (Cout,TS)
  for c in range(1, cin):
    y = y + w[c] * xq[c:c + 1, :]

  # per-output-channel rescale (kept separate from the weights so any sign of
  # alpha stays semantically exact w.r.t. the PReLU that follows)
  y = y * alpha_ref[...]
  # PReLU with per-output-channel slope
  y = jnp.where(y > 0, y, y * slope_ref[...])
  o_ref[0] = y.astype(o_ref.dtype)


def bin_wrapper_block(x_nchw, w_real, bn_gamma, bn_beta, bn_mean, bn_var,
                      rescale_alpha, prelu_slope, *, eps=1e-5, tile_s=2048,
                      out_dtype=jnp.float32):
  """Forward of BinWrapperBlock. x_nchw: (B, Cin, H, W) float32 -> (B, Cout, H, W)."""
  B, Cin, H, W = x_nchw.shape
  Cout = w_real.shape[0]
  S = H * W

  # --- glue (plain JAX, tiny tensors only): fold BN, binarize weights ---
  inv_std = 1.0 / jnp.sqrt(bn_var + eps)
  bn_scale = (bn_gamma * inv_std).reshape(Cin, 1).astype(jnp.float32)
  bn_shift = (bn_beta - bn_mean * bn_gamma * inv_std).reshape(Cin, 1).astype(jnp.float32)
  # binary weights: sign(W) in {-1,+1}; layout (Cin, Cout, 1) so the kernel can
  # index one (Cout, 1) column per input channel for the VPU FMA loop.
  w_bin = jnp.where(w_real >= 0, 1.0, -1.0).astype(jnp.float32)      # (Cout, Cin)
  w_k = jnp.transpose(w_bin, (1, 0)).reshape(Cin, Cout, 1)
  alpha = rescale_alpha.reshape(Cout, 1).astype(jnp.float32)
  slope = prelu_slope.reshape(Cout, 1).astype(jnp.float32)

  # channels-major activations: NCHW -> (B, Cin, H*W) is a free reshape (no
  # transpose / extra HBM pass).
  x3 = x_nchw.reshape(B, Cin, S)

  # spatial tile: as large as practical (multiple of 128 lanes), pad if needed
  ts = min(_round_up(tile_s, 128), _round_up(S, 128))
  S_pad = _round_up(S, ts)
  if S_pad != S:
    x3 = jnp.pad(x3, ((0, 0), (0, 0), (0, S_pad - S)))

  grid = (B, S_pad // ts)
  out3 = pl.pallas_call(
      _bin_block_kernel,
      out_shape=jax.ShapeDtypeStruct((B, Cout, S_pad), out_dtype),
      grid_spec=pltpu.PrefetchScalarGridSpec(
          num_scalar_prefetch=0,
          grid=grid,
          in_specs=[
              pl.BlockSpec((1, Cin, ts), lambda b, s: (b, 0, s)),   # x tile
              pl.BlockSpec((Cin, Cout, 1), lambda b, s: (0, 0, 0)), # binary weight
              pl.BlockSpec((Cin, 1), lambda b, s: (0, 0)),          # bn scale
              pl.BlockSpec((Cin, 1), lambda b, s: (0, 0)),          # bn shift
              pl.BlockSpec((Cout, 1), lambda b, s: (0, 0)),         # rescale alpha
              pl.BlockSpec((Cout, 1), lambda b, s: (0, 0)),         # prelu slope
          ],
          out_specs=pl.BlockSpec((1, Cout, ts), lambda b, s: (b, 0, s)),
      ),
      compiler_params=pltpu.CompilerParams(
          dimension_semantics=("parallel", "parallel")),
  )(x3, w_k, bn_scale, bn_shift, alpha, slope)

  if S_pad != S:
    out3 = out3[:, :, :S]
  # (B, Cout, H*W) -> NCHW is again a free reshape.
  # TODO(synk): if the downstream consumer tolerates bf16, pass out_dtype=jnp.bfloat16
  # to halve the write-back HBM traffic (kernel is memory-bound).
  return out3.reshape(B, Cout, H, W)


def _reference(x_nchw, w_real, bn_gamma, bn_beta, bn_mean, bn_var,
               rescale_alpha, prelu_slope, eps=1e-5):
  B, Cin, H, W = x_nchw.shape
  Cout = w_real.shape[0]
  scale = (bn_gamma / jnp.sqrt(bn_var + eps)).reshape(1, Cin, 1, 1)
  shift = (bn_beta - bn_mean * bn_gamma / jnp.sqrt(bn_var + eps)).reshape(1, Cin, 1, 1)
  xc = x_nchw * scale + shift
  xq = jnp.where(xc >= 0, 1.0, -1.0)
  wb = jnp.where(w_real >= 0, 1.0, -1.0)            # (Cout, Cin)
  y = jnp.einsum('bchw,oc->bohw', xq, wb)
  y = y * rescale_alpha.reshape(1, Cout, 1, 1)
  y = jnp.where(y > 0, y, y * prelu_slope.reshape(1, Cout, 1, 1))
  return y


if __name__ == "__main__":
  key = jax.random.PRNGKey(0)
  k_x, k_w, k_g, k_b, k_m, k_v, k_a, k_s = jax.random.split(key, 8)

  B, Cin, Cout, H, W = 2, 4, 8, 16, 16
  x = jax.random.normal(k_x, (B, Cin, H, W), dtype=jnp.float32)

  # deterministic synthetic parameters (no checkpoint load)
  w_real = jax.random.normal(k_w, (Cout, Cin), dtype=jnp.float32) * 0.1  # 1x1 conv
  bn_gamma = 1.0 + 0.1 * jax.random.normal(k_g, (Cin,), dtype=jnp.float32)
  bn_beta = 0.1 * jax.random.normal(k_b, (Cin,), dtype=jnp.float32)
  bn_mean = 0.1 * jax.random.normal(k_m, (Cin,), dtype=jnp.float32)
  bn_var = jnp.abs(1.0 + 0.1 * jax.random.normal(k_v, (Cin,), dtype=jnp.float32))
  rescale_alpha = jnp.abs(0.5 + 0.1 * jax.random.normal(k_a, (Cout,), dtype=jnp.float32))
  prelu_slope = 0.25 + 0.01 * jax.random.normal(k_s, (Cout,), dtype=jnp.float32)

  out = bin_wrapper_block(x, w_real, bn_gamma, bn_beta, bn_mean, bn_var,
                          rescale_alpha, prelu_slope)
  out = jax.block_until_ready(out)

  ref = _reference(x, w_real, bn_gamma, bn_beta, bn_mean, bn_var,
                   rescale_alpha, prelu_slope)
  np.testing.assert_allclose(np.asarray(out), np.asarray(ref), rtol=1e-5, atol=1e-5)

  print("KERNEL_OK")
</pallas_src>

<mosaic_0001>
module attributes {stable_mosaic.version = 11 : i64} {
  func.func @_bin_block_kernel(%arg0: i32, %arg1: i32, %arg2: memref<1x4x256xf32, #tpu.memory_space<vmem>>, %arg3: memref<4x8x1xf32, #tpu.memory_space<vmem>>, %arg4: memref<4x1xf32, #tpu.memory_space<vmem>>, %arg5: memref<4x1xf32, #tpu.memory_space<vmem>>, %arg6: memref<8x1xf32, #tpu.memory_space<vmem>>, %arg7: memref<8x1xf32, #tpu.memory_space<vmem>>, %arg8: memref<1x8x256xf32, #tpu.memory_space<vmem>>) attributes {dimension_semantics = [#tpu.dimension_semantics<parallel>, #tpu.dimension_semantics<parallel>], iteration_bounds = array<i64: 2, 1>, scalar_prefetch = 0 : i64, scratch_operands = 0 : i64, tpu.core_type = #tpu.core_type<tc>, window_params = [{transform_indices = @transform_0, window_bounds = array<i64: 1, 4, 256>}, {pipeline_mode = #tpu.pipeline_mode<synchronous>, transform_indices = @transform_1, window_bounds = array<i64: 4, 8, 1>}, {pipeline_mode = #tpu.pipeline_mode<synchronous>, transform_indices = @transform_2, window_bounds = array<i64: 4, 1>}, {pipeline_mode = #tpu.pipeline_mode<synchronous>, transform_indices = @transform_3, window_bounds = array<i64: 4, 1>}, {pipeline_mode = #tpu.pipeline_mode<synchronous>, transform_indices = @transform_4, window_bounds = array<i64: 8, 1>}, {pipeline_mode = #tpu.pipeline_mode<synchronous>, transform_indices = @transform_5, window_bounds = array<i64: 8, 1>}, {transform_indices = @transform_6, window_bounds = array<i64: 1, 8, 256>}]} {
    %c0 = arith.constant 0 : index
    %c0_0 = arith.constant 0 : index
    %c0_1 = arith.constant 0 : index
    %0 = vector.load %arg2[%c0, %c0_0, %c0_1] : memref<1x4x256xf32, #tpu.memory_space<vmem>>, vector<1x4x256xf32>
    %1 = vector.shape_cast %0 : vector<1x4x256xf32> to vector<4x256xf32>
    %c0_2 = arith.constant 0 : index
    %c0_3 = arith.constant 0 : index
    %2 = vector.load %arg4[%c0_2, %c0_3] : memref<4x1xf32, #tpu.memory_space<vmem>>, vector<4x1xf32>
    %3 = vector.broadcast %2 : vector<4x1xf32> to vector<4x256xf32>
    %4 = arith.mulf %1, %3 : vector<4x256xf32>
    %c0_4 = arith.constant 0 : index
    %c0_5 = arith.constant 0 : index
    %5 = vector.load %arg5[%c0_4, %c0_5] : memref<4x1xf32, #tpu.memory_space<vmem>>, vector<4x1xf32>
    %6 = vector.broadcast %5 : vector<4x1xf32> to vector<4x256xf32>
    %7 = arith.addf %4, %6 : vector<4x256xf32>
    %cst = arith.constant 0.000000e+00 : f32
    %8 = vector.broadcast %cst : f32 to vector<4x256xf32>
    %9 = arith.cmpf oge, %7, %8 : vector<4x256xf32>
    %cst_6 = arith.constant 1.000000e+00 : f32
    %cst_7 = arith.constant -1.000000e+00 : f32
    %10 = vector.broadcast %cst_6 : f32 to vector<4x256xf32>
    %11 = vector.broadcast %cst_7 : f32 to vector<4x256xf32>
    %12 = arith.select %9, %10, %11 : vector<4x256xi1>, vector<4x256xf32>
    %c0_8 = arith.constant 0 : index
    %c0_9 = arith.constant 0 : index
    %c0_10 = arith.constant 0 : index
    %13 = vector.load %arg3[%c0_8, %c0_9, %c0_10] : memref<4x8x1xf32, #tpu.memory_space<vmem>>, vector<4x8x1xf32>
    %14 = vector.extract_strided_slice %13 {offsets = [0, 0, 0], sizes = [1, 8, 1], strides = [1, 1, 1]} : vector<4x8x1xf32> to vector<1x8x1xf32>
    %15 = vector.shape_cast %14 : vector<1x8x1xf32> to vector<8x1xf32>
    %16 = vector.extract_strided_slice %12 {offsets = [0, 0], sizes = [1, 256], strides = [1, 1]} : vector<4x256xf32> to vector<1x256xf32>
    %17 = vector.broadcast %15 : vector<8x1xf32> to vector<8x256xf32>
    %18 = vector.broadcast %16 : vector<1x256xf32> to vector<8x256xf32>
    %19 = arith.mulf %17, %18 : vector<8x256xf32>
    %20 = vector.extract_strided_slice %13 {offsets = [1, 0, 0], sizes = [1, 8, 1], strides = [1, 1, 1]} : vector<4x8x1xf32> to vector<1x8x1xf32>
    %21 = vector.shape_cast %20 : vector<1x8x1xf32> to vector<8x1xf32>
    %22 = vector.extract_strided_slice %12 {offsets = [1, 0], sizes = [1, 256], strides = [1, 1]} : vector<4x256xf32> to vector<1x256xf32>
    %23 = vector.broadcast %21 : vector<8x1xf32> to vector<8x256xf32>
    %24 = vector.broadcast %22 : vector<1x256xf32> to vector<8x256xf32>
    %25 = arith.mulf %23, %24 : vector<8x256xf32>
    %26 = arith.addf %19, %25 : vector<8x256xf32>
    %27 = vector.extract_strided_slice %13 {offsets = [2, 0, 0], sizes = [1, 8, 1], strides = [1, 1, 1]} : vector<4x8x1xf32> to vector<1x8x1xf32>
    %28 = vector.shape_cast %27 : vector<1x8x1xf32> to vector<8x1xf32>
    %29 = vector.extract_strided_slice %12 {offsets = [2, 0], sizes = [1, 256], strides = [1, 1]} : vector<4x256xf32> to vector<1x256xf32>
    %30 = vector.broadcast %28 : vector<8x1xf32> to vector<8x256xf32>
    %31 = vector.broadcast %29 : vector<1x256xf32> to vector<8x256xf32>
    %32 = arith.mulf %30, %31 : vector<8x256xf32>
    %33 = arith.addf %26, %32 : vector<8x256xf32>
    %34 = vector.extract_strided_slice %13 {offsets = [3, 0, 0], sizes = [1, 8, 1], strides = [1, 1, 1]} : vector<4x8x1xf32> to vector<1x8x1xf32>
    %35 = vector.shape_cast %34 : vector<1x8x1xf32> to vector<8x1xf32>
    %36 = vector.extract_strided_slice %12 {offsets = [3, 0], sizes = [1, 256], strides = [1, 1]} : vector<4x256xf32> to vector<1x256xf32>
    %37 = vector.broadcast %35 : vector<8x1xf32> to vector<8x256xf32>
    %38 = vector.broadcast %36 : vector<1x256xf32> to vector<8x256xf32>
    %39 = arith.mulf %37, %38 : vector<8x256xf32>
    %40 = arith.addf %33, %39 : vector<8x256xf32>
    %c0_11 = arith.constant 0 : index
    %c0_12 = arith.constant 0 : index
    %41 = vector.load %arg6[%c0_11, %c0_12] : memref<8x1xf32, #tpu.memory_space<vmem>>, vector<8x1xf32>
    %42 = vector.broadcast %41 : vector<8x1xf32> to vector<8x256xf32>
    %43 = arith.mulf %40, %42 : vector<8x256xf32>
    %cst_13 = arith.constant 0.000000e+00 : f32
    %44 = vector.broadcast %cst_13 : f32 to vector<8x256xf32>
    %45 = arith.cmpf ogt, %43, %44 : vector<8x256xf32>
    %c0_14 = arith.constant 0 : index
    %c0_15 = arith.constant 0 : index
    %46 = vector.load %arg7[%c0_14, %c0_15] : memref<8x1xf32, #tpu.memory_space<vmem>>, vector<8x1xf32>
    %47 = vector.broadcast %46 : vector<8x1xf32> to vector<8x256xf32>
    %48 = arith.mulf %43, %47 : vector<8x256xf32>
    %49 = arith.select %45, %43, %48 : vector<8x256xi1>, vector<8x256xf32>
    %c0_16 = arith.constant 0 : index
    %c0_17 = arith.constant 0 : index
    %c0_18 = arith.constant 0 : index
    %50 = vector.load %arg8[%c0_16, %c0_17, %c0_18] : memref<1x8x256xf32, #tpu.memory_space<vmem>>, vector<1x8x256xf32>
    %51 = vector.shape_cast %50 : vector<1x8x256xf32> to vector<8x256xf32>
    %52 = vector.shape_cast %49 : vector<8x256xf32> to vector<1x8x256xf32>
    tpu.vector_store %arg8[%c0_16, %c0_17, %c0_18], %52 {strides = array<i32>} : memref<1x8x256xf32, #tpu.memory_space<vmem>>, vector<1x8x256xf32>,
    return
  }
  func.func @transform_0(%arg0: i32, %arg1: i32) -> (i32, i32, i32) {
    %c0_i32 = arith.constant 0 : i32
    %c0_i32_0 = arith.constant 0 : i32
    return %arg0, %c0_i32, %arg1 : i32, i32, i32
  }
  func.func @transform_1(%arg0: i32, %arg1: i32) -> (i32, i32, i32) {
    %c0_i32 = arith.constant 0 : i32
    %c0_i32_0 = arith.constant 0 : i32
    %c0_i32_1 = arith.constant 0 : i32
    %c0_i32_2 = arith.constant 0 : i32
    return %c0_i32, %c0_i32_0, %c0_i32_1 : i32, i32, i32
  }
  func.func @transform_2(%arg0: i32, %arg1: i32) -> (i32, i32) {
    %c0_i32 = arith.constant 0 : i32
    %c0_i32_0 = arith.constant 0 : i32
    %c0_i32_1 = arith.constant 0 : i32
    return %c0_i32, %c0_i32_0 : i32, i32
  }
  func.func @transform_3(%arg0: i32, %arg1: i32) -> (i32, i32) {
    %c0_i32 = arith.constant 0 : i32
    %c0_i32_0 = arith.constant 0 : i32
    %c0_i32_1 = arith.constant 0 : i32
    return %c0_i32, %c0_i32_0 : i32, i32
  }
  func.func @transform_4(%arg0: i32, %arg1: i32) -> (i32, i32) {
    %c0_i32 = arith.constant 0 : i32
    %c0_i32_0 = arith.constant 0 : i32
    %c0_i32_1 = arith.constant 0 : i32
    return %c0_i32, %c0_i32_0 : i32, i32
  }
  func.func @transform_5(%arg0: i32, %arg1: i32) -> (i32, i32) {
    %c0_i32 = arith.constant 0 : i32
    %c0_i32_0 = arith.constant 0 : i32
    %c0_i32_1 = arith.constant 0 : i32
    return %c0_i32, %c0_i32_0 : i32, i32
  }
  func.func @transform_6(%arg0: i32, %arg1: i32) -> (i32, i32, i32) {
    %c0_i32 = arith.constant 0 : i32
    %c0_i32_0 = arith.constant 0 : i32
    return %arg0, %c0_i32, %arg1 : i32, i32, i32
  }
}

</mosaic_0001>

<bundles_post_ra>
// kernel: tpu_custom_call.1
= control target key start
LH: loop header
LB: loop body
LE: loop exit
PB: predicated region body
PF: predicated region fallthrough
CT: control target
= control target key end

     0   :  { %11 = vsyncpa [#allocation3], 0  ;;  %s869_s0 = inlined_call_operand.vmem [shape: f32[2,4,256], index: 0, kind: input, shape index: {}]   ;;  %s870_s1 = inlined_call_operand.vmem [shape: f32[4,8,1], index: 1, kind: input, shape index: {}]   ;;  %s871_s2 = inlined_call_operand.vmem [shape: f32[4,1], index: 2, kind: input, shape index: {}]   ;;  %s872_s3 = inlined_call_operand.vmem [shape: f32[4,1], index: 3, kind: input, shape index: {}]   ;;  %s873_s4 = inlined_call_operand.vmem [shape: f32[8,1], index: 4, kind: input, shape index: {}]   ;;  %s874_s5 = inlined_call_operand.vmem [shape: f32[8,1], index: 5, kind: input, shape index: {}]   ;;  %s875_s6 = inlined_call_operand.hbm [shape: f32[2,8,256], index: 6, kind: output, shape index: {}]  }
   0x1   :  { %13 = vsyncpa [#allocation3 + $0x1], 0  ;;  %s730_s21 = smov 0   ;;  %s732_s22 = smov 0  }
   0x2   :  { %s734_s23 = smov 0   ;;  %s736_s24 = smov 0  }
   0x3   :  { %s738_s25 = smov 0   ;;  %s740_s26 = smov 0  }
   0x4 LB: > { %s538_s27 = sadd.s32 4294967295, %s689_s26   ;;  %s539_s28 = sadd.s32 4294967294, %s689_s26   ;;  %s689_s26 = sphi %s740_s26, %s19_s26   ;;  %s685_s25 = sphi %s738_s25, %s882_s25   ;;  %s681_s24 = sphi %s736_s24, %s881_s24   ;;  %s677_s23 = sphi %s734_s23, %s880_s23   ;;  %s673_s22 = sphi %s732_s22, %s879_s22   ;;  %s669_s21 = sphi %s730_s21, %s878_s21  }
   0x5   : > { %s31_s29 = sadd.s32 1, %s685_s25  ;;  %s173_s30 = sadd.s32 1, %s677_s23 }
   0x6   : > { %p33_p0 = scmp.ge.s32.totalorder %s31_s29, 2  ;;  %p183_p1 = scmp.ne.s32.totalorder %s677_s23, %s673_s22 }
   0x7   : > { %p184_p2 = scmp.eq.s32.totalorder %s538_s27, 1  ;;  %p189_p3 = scmp.ne.s32.totalorder %s673_s22, %s669_s21 }
   0x8   : > { %s884_s29 = smov (%p33_p0, %s31_s29), 0  ;;  %p190_p5 = scmp.eq.s32.totalorder %s539_s28, 1 }
   0x9   : > { %p770_p4 = por %p184_p2, %p183_p1  ;;  %s168_s8 = ssub.s32 %s685_s25, %s884_s29 }
   0xa   : > { %p542_p6 = scmp.ge.s32.totalorder %s689_s26, 1  ;;  %p171_p7 = scmp.eq.s32.totalorder %s168_s8, 0 }
   0xb   : > { %p777_p8 = por %p190_p5, %p189_p3  ;;  %p236_p9 = scmp.lt.s32.totalorder %s689_s26, 3 }
   0xc   : > { %s783_s10 = scalar_select %p171_p7, %s677_s23, %s173_s30  }
   0xd   : > { %p237_p10 = pnand %p542_p6, %p236_p9 }
   0xe   : > { %p271_p11 = scmp.lt.s32.totalorder (!%p237_p10), %s681_s24, 1  ;;  %s267_s18 = sand.u32 (!%p237_p10), 1, %s673_s22  }
   0xf   : > { %240 = sbr.rel (%p237_p10) target bundleno = 187 (0xbb), region = 44  ;;  %s543_s19 = sshll.u32 (!%p237_p10), %s267_s18, 4 }
  0x10   : > { %s552_s20 = sshll.u32 (!%p237_p10), %s681_s24, 8  ;;  %s269_s27 = scalar_lea.vmem (!%p237_p10), [#allocation2], %s543_s19 }
  0x11   : > { %s462_s28 = sshll.u32 (!%p237_p10), %s269_s27, 4  ;;  %s821_s11 = scalar_lea.hbm (!%p237_p10), %s875_s6, %s552_s20  ;;  %s823_s28 = int_to_ptr.vmem [resolvable:$true] %s462_s28 }
  0x12   : > { %s613_s12 = scalar_lea.vmem (!%p237_p10), %s823_s28, 256 }
  0x13   : > { %p614_p12 = scmp.ne.s32.totalorder (!%p237_p10), %s823_s28, %s613_s12 }
  0x14   : > { %v312_v0 = vld [vmem:[%s870_s1] sm:$0xff]  ;;  %v691_v2 = vmov 0   ;;  %v313_v3 = vld [vmem:[%s870_s1 + $0x8] sm:$0xff]  ;;  %v315_v5 = vld [vmem:[%s870_s1 + $0x18] sm:$0xff]  ;;  %v692_v9 = vmov 839922192   ;;  %v290_v11 = vlaneseq }
  0x15   : > { %v282_v1 = vld [vmem:[%s871_s2] sm:$0xf]  ;;  %612 = vset.pattern.permute.xlu1 %v691_v2  ;;  %611 = vset.pattern.permute.xlu0 %v691_v2  ;;  %v314_v6 = vld [vmem:[%s870_s1 + $0x10] sm:$0xff]  ;;  %v288_v10 = vunpack.c.l.s4 %v692_v9  ;;  %s272_s13 = scalar_select %p271_p11, %s681_s24, 1  ;;  %v693_v31 = vmov -1.0  }
  0x16   : > { %318 = vperm.xlu1 %612, %v312_v0   ;;  %285 = vperm.xlu0 %611, %v282_v1   ;;  %v296_v4 = vld [vmem:[%s872_s3] sm:$0xf]  ;;  %v291_v13 = vshrl.u32 %v290_v11, 7  ;;  %s446_s24 = scalar_lea.sflag [#allocation3], %s267_s18  ;;  %p615_p13 = pnand %p614_p12, %p770_p4 }
  0x17   : > { %v433_v7 = vld [vmem:[%s874_s5] sm:$0xff]  ;;  %v289_v12 = vunpack.c.0.s8 %v288_v10  ;;  %s551_s14 = sshll.u32 %s272_s13, 3  ;;  %s694_s13 = smov [#allocation2]  }
  0x18   : > { %v423_v8 = vld [vmem:[%s873_s4] sm:$0xff]  ;;  %s278_s17 = scalar_lea.vmem %s869_s0, %s551_s14  ;;  %v403_v21 = vsub.s32 3, %v291_v13  ;;  %v407_v24 = vsub.s32 7, %v291_v13  ;;  %v324_v25 = vsub.s32 0, %v291_v13  ;;  %v328_v26 = vsub.s32 4, %v291_v13  ;;  %p616_p0 = pneg %p615_p13 }
  0x19   : > { %v292_v14 = vsub.s32 %v289_v12, %v291_v13  ;;  %v281_v17 = vld [vmem:[%s278_s17] sm:$0xff]  ;;  %v349_v27 = vsub.s32 1, %v291_v13  ;;  %v353_v28 = vsub.s32 5, %v291_v13  ;;  %v376_v29 = vsub.s32 2, %v291_v13  ;;  %s617_s14 = sshll.u32 %s694_s13, 4  ;;  %s618_s14 = int_to_ptr.vmem [resolvable:$false] %s617_s14 }
  0x1a   : > { %344 = vperm.xlu1 %612, %v313_v3   ;;  %299 = vperm.xlu0 %611, %v296_v4   ;;  %v380_v30 = vsub.s32 6, %v291_v13  ;;  %s619_s15 = scalar_lea.vmem %s618_s14, 512  ;;  %p620_p1 = scmp.lt.s32.totalorder %s823_s28, %s618_s14 }
  0x1b   : > { %p621_p2 = scmp.lt.s32.totalorder %s619_s15, %s613_s12 }
  0x1d   : > { %p622_p3 = por %p621_p2, %p620_p1 }
  0x1e   : > { %398 = vperm.xlu1 %612, %v315_v5   ;;  %371 = vperm.xlu0 %611, %v314_v6  }
  0x1f   : > { %p623_p5 = pnand %p622_p3, %p616_p0 }
  0x22   : > { %436 = vperm.xlu1 %612, %v433_v7   ;;  %426 = vperm.xlu0 %611, %v423_v8  }
  0x91   : > { %v286_v15 = vpop.permute.xlu0 %285  ;;  %v319_v22 = vpop.permute.xlu1 %318 }
  0x92   : > { %v293_v16 = vrot.slane %v286_v15, %v292_v14 }
  0x94   : > { %v295_v19 = vmul.f32 %v293_v16, %v281_v17 }
  0x95   : > { %v300_v18 = vpop.permute.xlu0 %299  ;;  %v345_v41 = vpop.permute.xlu1 %344 }
  0x96   : > { %v307_v20 = vrot.slane %v300_v18, %v292_v14 }
  0x98   : > { %v309_v23 = vadd.f32 %v307_v20, %v295_v19 }
  0x99   : > { %v372_v54 = vpop.permute.xlu0 %371  ;;  %v399_v59 = vpop.permute.xlu1 %398 }
  0x9a   : > { %vm310_vm0 = vcmp.ge.f32.partialorder %v309_v23, 0.0 }
  0x9b   : > { %v311_v32 = vsel %vm310_vm0, 1.0, %v693_v31 }
  0x9c   : > { %v404_v33 = vrot.slane %v311_v32, %v403_v21  ;;  %v408_v34 = vrot.slane %v311_v32, %v407_v24  ;;  %v325_v35 = vrot.slane %v311_v32, %v324_v25  ;;  %v329_v36 = vrot.slane %v311_v32, %v328_v26 }
  0x9d   : > { %v350_v37 = vrot.slane %v311_v32, %v349_v27  ;;  %v354_v38 = vrot.slane %v311_v32, %v353_v28  ;;  %v377_v39 = vrot.slane %v311_v32, %v376_v29  ;;  %v381_v40 = vrot.slane %v311_v32, %v380_v30  ;;  %v427_v2 = vpop.permute.xlu0 %426  ;;  %v437_v5 = vpop.permute.xlu1 %436 }
  0x9e   : > { %v335_v42 = vrot.slane %v325_v35, %v324_v25  ;;  %v339_v43 = vrot.slane %v329_v36, %v324_v25  ;;  %v414_v50 = vrot.slane %v404_v33, %v403_v21  ;;  %v418_v51 = vrot.slane %v408_v34, %v403_v21 }
  0x9f   : > { %v360_v44 = vrot.slane %v350_v37, %v349_v27  ;;  %v364_v45 = vrot.slane %v354_v38, %v349_v27  ;;  %v387_v46 = vrot.slane %v377_v39, %v376_v29  ;;  %v391_v47 = vrot.slane %v381_v40, %v376_v29 }
  0xa0   : > { %v340_v48 = vmul.f32 %v335_v42, %v319_v22  ;;  %v341_v49 = vmul.f32 %v339_v43, %v319_v22  ;;  %v419_v60 = vmul.f32 %v414_v50, %v399_v59  ;;  %v420_v61 = vmul.f32 %v418_v51, %v399_v59 }
  0xa1   : > { %v365_v52 = vmul.f32 %v360_v44, %v345_v41  ;;  %v366_v53 = vmul.f32 %v364_v45, %v345_v41  ;;  %v392_v57 = vmul.f32 %v387_v46, %v372_v54  ;;  %v393_v58 = vmul.f32 %v391_v47, %v372_v54 }
  0xa3   : > { %v367_v55 = vadd.f32 %v365_v52, %v340_v48  ;;  %v368_v56 = vadd.f32 %v366_v53, %v341_v49 }
  0xa5   : > { %v394_v62 = vadd.f32 %v392_v57, %v367_v55  ;;  %v395_v63 = vadd.f32 %v393_v58, %v368_v56 }
  0xa7   : > { %v421_v0 = vadd.f32 %v419_v60, %v394_v62  ;;  %v422_v1 = vadd.f32 %v420_v61, %v395_v63 }
  0xa9   : > { %v429_v3 = vmul.f32 %v427_v2, %v421_v0  ;;  %v430_v4 = vmul.f32 %v427_v2, %v422_v1 }
  0xab   : > { %vm431_vm1 = vcmp.gt.f32.partialorder %v429_v3, 0.0  ;;  %vm432_vm2 = vcmp.gt.f32.partialorder %v430_v4, 0.0  ;;  %v439_v6 = vmul.f32 %v437_v5, %v429_v3  ;;  %v440_v7 = vmul.f32 %v437_v5, %v430_v4 }
  0xad   : > { %v441_v8 = vsel %vm431_vm1, %v429_v3, %v439_v6  ;;  %v442_v9 = vsel %vm432_vm2, %v430_v4, %v440_v7 }
  0xae   : > { %443 = vst [vmem:[%s269_s27] sm:$0xff] %v441_v8  ;;  %444 = vst [vmem:[%s269_s27 + $0x8] sm:$0xff] %v442_v9 }
  0xaf   : > { %626 = shalt.err (!%p623_p5)
}
  0xb0   : > { %s627_s16 = scalar_lea.hbm %s821_s11, 256  ;;  %s631_s19 = scalar_lea.hbm %s875_s6, 512 }
  0xb1   : > { %p628_p6 = scmp.ne.s32.totalorder %s821_s11, %s627_s16  ;;  %p632_p10 = scmp.lt.s32.totalorder %s821_s11, %s875_s6 }
  0xb2   : > { %p633_p11 = scmp.lt.s32.totalorder %s631_s19, %s627_s16 }
  0xb3   : > { %p629_p7 = pnand %p628_p6, %p770_p4 }
  0xb4   : > { %p634_p12 = por %p633_p11, %p632_p10 }
  0xb5   : > { %p630_p9 = pneg %p629_p7 }
  0xb7   : > { %p635_p13 = pnand %p634_p12, %p630_p9 }
  0xb9   : > { %638 = shalt.err (!%p635_p13)
}
  0xba   : > { %553 = dma.vmem_to_hbm [thread:$0]  (%p770_p4), %s823_s28, 256, %s821_s11, %s446_s24  }
  0xbb PF: > { %p559_p0 = scmp.ge.s32.totalorder %s689_s26, 2  ;;  %s474_s30 = sand.u32 1, %s669_s21  }
  0xbc   : > { %s475_s8 = scalar_lea.sflag [#allocation3], %s474_s30 }
  0xbd   : > { %p556_p1 = pnand %p559_p0, %p777_p8 }
  0xbf   : > { %p557_p2 = pneg %p556_p1 }
  0xc1   : > { %664 = dma.done.wait (%p557_p2), %s475_s8, 256  }
  0xc2   : > { %666 = vsyncadd (%p557_p2), %s475_s8, 4294967040  ;;  %s19_s26 = sadd.s32 1, %s689_s26   ;;  %s878_s21 = smov %s673_s22 }
  0xc3   : > { %p16_p3 = scmp.ge.s32.totalorder %s19_s26, 4   ;;  %s879_s22 = smov %s677_s23 }
  0xc4   : > { %s880_s23 = smov %s783_s10  ;;  %s881_s24 = smov %s685_s25 }
  0xc5   : > { %s882_s25 = smov %s884_s29  ;;  %18 = sbr.rel (!%p16_p3) target bundleno = 4 (0x4), region = 79 }
  0xca   :  { %480 = vsyncpa [#allocation3], 1 }
  0xcb   :  { %482 = vsyncpa [#allocation3 + $0x1], 1 }

</bundles_post_ra>
